<compile_context>
chip_gen: v5e
topology: v5e:2x2
jax: 0.10.0
libtpu: 0.0.40
codegen_flags: <defaults>
</compile_context>

<pallas_src>
import functools

import jax
import jax.numpy as jnp
from jax.experimental import pallas as pl
from jax.experimental.pallas import tpu as pltpu


_INV_SQRT2 = 0.7071067811865476


def _erf(x):
    # Abramowitz & Stegun 7.1.26 rational approximation (abs err < 1.5e-7).
    # exp and the (approx) reciprocal both land on the EUP slot, keeping the
    # VALU — the binding slot in the dwconv/GELU region — free.
    p = 0.3275911
    a1, a2, a3, a4, a5 = (0.254829592, -0.284496736, 1.421413741,
                          -1.453152027, 1.061405429)
    sgn = jnp.where(x >= 0.0, 1.0, -1.0)
    ax = jnp.abs(x)
    t = pl.reciprocal(1.0 + p * ax, approx=True)          # EUP, not VALU
    poly = ((((a5 * t + a4) * t + a3) * t + a2) * t + a1) * t
    return sgn * (1.0 - poly * jnp.exp(-ax * ax))


def _gelu_exact(x):
    # PyTorch F.gelu default ("none") = exact erf-based GELU.
    return 0.5 * x * (1.0 + _erf(x * _INV_SQRT2))


def _channel_mean(x, c):
    """Mean over the channel/sublane axis of a (C, HW) tile.

    Small C: sublane-slice add tree (VALU).  Larger C: ones-row matmul so the
    reduction runs on the otherwise-idle MXU instead of the XLU, which the
    depthwise rolls already occupy (only 2 XLUs on v6e/v7x)."""
    if c <= 8:
        acc = x[0:1, :]
        for i in range(1, c):
            acc = acc + x[i:i + 1, :]
        return acc * (1.0 / c)
    ones = jnp.ones((1, c), x.dtype)
    return jnp.dot(ones, x, preferred_element_type=jnp.float32) * (1.0 / c)


def _proj1x1(w, x):
    """1x1 conv: (Cout, Cin) @ (Cin, HW) -> (Cout, HW), lane-dense in HW."""
    c_out, c_in = w.shape
    if c_in <= 8:
        # Tiny channel counts: a few VPU broadcast-FMAs beat a latency-bound,
        # <1%-occupied MXU matmul.
        acc = w[:, 0:1] * x[0:1, :]
        for c in range(1, c_in):
            acc = acc + w[:, c:c + 1] * x[c:c + 1, :]
        return acc
    # Production-sized channels: MXU matmul.  Inputs stay f32 (multi-pass MXU)
    # so the residual path keeps reference precision; cast to bf16 here only if
    # profiling shows the MXU is the binding unit and tolerance allows.
    return jnp.dot(w, x, preferred_element_type=jnp.float32)


def feedforward_kernel(x_ref, p_ref, o_ref, *, C, Hf, H, W):
    B_blk = x_ref.shape[0]
    HW = x_ref.shape[2]
    C2 = 2 * Hf

    # ---- unpack the single packed parameter tile (one DMA, hoisted) --------
    p = p_ref[...]                               # (C2, 14 + C + Hf)
    ln_w = p[:C, 0:1]
    ln_b = p[:C, 1:2]
    b_in = p[:, 2:3]
    b_dw = p[:, 3:4]
    b_out = p[:C, 4:5]
    dw = p[:, 5:14]                              # (C2, 9) depthwise taps
    w_in = p[:, 14:14 + C]                       # (C2, C)
    w_out = p[:C, 14 + C:14 + C + Hf]            # (C, Hf)

    # ---- boundary masks for the 3x3 rolls, built in-registers (no col/row
    # inputs).  Row tests need only the flat index; column tests use a bitwise
    # AND when W is a power of two.  Hoisted outside the per-image loop.
    lane = jax.lax.broadcasted_iota(jnp.int32, (1, HW), 1)
    if W & (W - 1) == 0:
        col = lane & (W - 1)
    else:
        # TODO(synk): vector s32 rem is slow on TPU; for non-power-of-two W a
        # precomputed col map input would be preferable.
        col = jax.lax.rem(lane, jnp.int32(W))
    vx = {-1: col >= 1, 1: col <= W - 2}
    vy = {-1: lane >= W, 1: lane < (H - 1) * W}
    tap_mask = {}
    for k in range(9):
        if k == 4:
            continue
        dy, dx = k // 3 - 1, k % 3 - 1
        m = None
        if dx != 0:
            m = vx[dx]
        if dy != 0:
            m = vy[dy] if m is None else jnp.logical_and(m, vy[dy])
        tap_mask[k] = m

    @pl.loop(0, B_blk)
    def _per_image(b):
        x = x_ref[b]                             # (C, HW) residual input

        # ---- LayerNorm over channels (channels_first == sublane axis) ------
        u = _channel_mean(x, C)
        d = x - u
        s = _channel_mean(d * d, C)              # biased variance, as in module
        xn = d * jax.lax.rsqrt(s + 1e-6)         # EUP rsqrt
        xn = xn * ln_w + ln_b                    # (C,1) broadcast along lanes

        # ---- project_in: 1x1 conv -------------------------------------------
        h = _proj1x1(w_in, xn) + b_in            # (C2, HW)

        # ---- depthwise 3x3, padding=1: lane rolls (XLU) + boundary masks ----
        acc = h * dw[:, 4:5]                     # center tap: no roll, no mask
        for k in range(9):
            if k == 4:
                continue
            dy, dx = k // 3 - 1, k % 3 - 1
            off = dy * W + dx
            term = pltpu.roll(h, shift=(-off) % HW, axis=1)   # XLU slot
            term = jnp.where(tap_mask[k], term, 0.0)
            acc = acc + term * dw[:, k:k + 1]
        acc = acc + b_dw

        # ---- gated GELU: chunk(2) along channels, gelu(x1) * x2 -------------
        g = _gelu_exact(acc[:Hf, :]) * acc[Hf:, :]

        # ---- project_out: 1x1 conv + residual (lane-dense store) ------------
        o_ref[b] = _proj1x1(w_out, g) + b_out + x


def _pack_params(params):
    """Pack all small parameters into one (C2, 14+C+Hf) tile (one input/DMA)."""
    C2, C = params["w_in"].shape
    Hf = params["w_out"].shape[1]
    assert C <= C2 and Hf <= C2
    pk = jnp.zeros((C2, 14 + C + Hf), jnp.float32)
    pk = pk.at[:C, 0].set(params["ln_w"].reshape(C))
    pk = pk.at[:C, 1].set(params["ln_b"].reshape(C))
    pk = pk.at[:, 2].set(params["b_in"].reshape(C2))
    pk = pk.at[:, 3].set(params["b_dw"].reshape(C2))
    pk = pk.at[:C, 4].set(params["b_out"].reshape(C))
    pk = pk.at[:, 5:14].set(params["dw_w"])
    pk = pk.at[:, 14:14 + C].set(params["w_in"])
    pk = pk.at[:C, 14 + C:].set(params["w_out"])
    return pk


def _pick_batch_block(B, C, HW, target_bytes=512 * 1024):
    """Images per grid step: big enough to amortize per-step pipeline overhead
    and make multi-hundred-KiB DMAs; small enough that in/out double buffers +
    C2-wide intermediates stay a few MiB (fits v5e's 16 MiB scoped default and
    v7x's 64 MiB physical VMEM); and leaving >= 2 grid steps when B >= 2 so
    both v7x TensorCores get work."""
    per_image = C * HW * 4
    bblk = max(1, min(B, target_bytes // max(per_image, 1)))
    if B >= 2:
        bblk = min(bblk, max(1, B // 2))
    while B % bblk:
        bblk -= 1
    return bblk


def feedforward(x_nchw, params):
    """x_nchw: (B, dim, H, W) float32 — same layout the PyTorch module takes."""
    B, C, H, W = x_nchw.shape
    HW = H * W
    C2, _ = params["w_in"].shape
    Hf = params["w_out"].shape[1]
    assert C2 == 2 * Hf

    x = x_nchw.reshape(B, C, HW)                 # free reshape: no transpose
    pk = _pack_params(params)
    bblk = _pick_batch_block(B, C, HW)
    grid = (B // bblk,)

    kernel = functools.partial(feedforward_kernel, C=C, Hf=Hf, H=H, W=W)

    flops_per_px = 2 * C2 * C + 2 * C * Hf + 27 * C2 + 10 * C + 20 * Hf
    cost = pl.CostEstimate(
        flops=int(B * HW * flops_per_px),
        transcendentals=int(B * HW * Hf),
        bytes_accessed=int(2 * x.size * x.dtype.itemsize + pk.size * 4),
    )

    # Rough per-step VMEM: double-buffered in/out blocks + C2-wide live
    # intermediates.  Only raise the scoped limit when actually needed, capped
    # well below v7x's 64 MiB physical VMEM.
    block_bytes = bblk * C * HW * 4
    vmem_est = block_bytes * (4 + 10 * C2 // max(C, 1))
    ckw = dict(dimension_semantics=("parallel",))
    if vmem_est > 12 * 1024 * 1024:
        ckw["vmem_limit_bytes"] = int(min(48 * 1024 * 1024, 2 * vmem_est))

    out = pl.pallas_call(
        kernel,
        out_shape=jax.ShapeDtypeStruct((B, C, HW), jnp.float32),
        grid=grid,
        in_specs=[
            pl.BlockSpec((bblk, C, HW), lambda g: (g, 0, 0)),   # x block
            pl.BlockSpec(pk.shape, lambda g: (0, 0)),           # packed params
        ],
        out_specs=pl.BlockSpec((bblk, C, HW), lambda g: (g, 0, 0)),
        input_output_aliases={0: 0},             # output reuses x's HBM buffer
        compiler_params=pltpu.CompilerParams(**ckw),
        cost_estimate=cost,
    )(x, pk)
    return out.reshape(B, C, H, W)


def reference(x, p):
    """Pure-JAX NCHW reference mirroring the PyTorch forward."""
    C = x.shape[1]
    Hf = p["w_out"].shape[1]
    H, W = x.shape[2], x.shape[3]
    u = x.mean(1, keepdims=True)
    s = ((x - u) ** 2).mean(1, keepdims=True)
    xn = (x - u) / jnp.sqrt(s + 1e-6)
    xn = p["ln_w"].reshape(1, C, 1, 1) * xn + p["ln_b"].reshape(1, C, 1, 1)
    h = jnp.einsum("dc,bchw->bdhw", p["w_in"], xn) + p["b_in"].reshape(1, -1, 1, 1)
    hp = jnp.pad(h, ((0, 0), (0, 0), (1, 1), (1, 1)))
    acc = jnp.zeros_like(h)
    for ky in range(3):
        for kx in range(3):
            acc = acc + (hp[:, :, ky:ky + H, kx:kx + W]
                         * p["dw_w"][:, ky * 3 + kx].reshape(1, -1, 1, 1))
    acc = acc + p["b_dw"].reshape(1, -1, 1, 1)
    x1, x2 = acc[:, :Hf], acc[:, Hf:]
    g = jax.nn.gelu(x1, approximate=False) * x2
    out = jnp.einsum("dc,bchw->bdhw", p["w_out"], g) + p["b_out"].reshape(1, -1, 1, 1)
    return out + x


if __name__ == "__main__":
    key = jax.random.PRNGKey(0)
    B, dim, H, W = 2, 4, 16, 16
    Hf = dim                      # ffn_expansion_factor = 1
    C2 = 2 * Hf
    ks = jax.random.split(key, 8)
    params = {
        "ln_w": jnp.ones((dim, 1), jnp.float32),   # LayerNorm init: ones / zeros
        "ln_b": jnp.zeros((dim, 1), jnp.float32),
        "w_in": 0.2 * jax.random.normal(ks[0], (C2, dim), jnp.float32),
        "b_in": 0.1 * jax.random.normal(ks[1], (C2, 1), jnp.float32),
        "dw_w": 0.2 * jax.random.normal(ks[2], (C2, 9), jnp.float32),  # (chan, ky*3+kx)
        "b_dw": 0.1 * jax.random.normal(ks[3], (C2, 1), jnp.float32),
        "w_out": 0.2 * jax.random.normal(ks[4], (dim, Hf), jnp.float32),
        "b_out": 0.1 * jax.random.normal(ks[5], (dim, 1), jnp.float32),
    }
    x = jax.random.normal(ks[6], (B, dim, H, W), jnp.float32)

    y_ref = reference(x, params)                  # reference first (x stays valid)
    y = jax.block_until_ready(feedforward(x, params))

    assert y.shape == x.shape
    err = float(jnp.max(jnp.abs(y - y_ref)))
    assert jnp.allclose(y, y_ref, atol=2e-3, rtol=2e-3), err
    print("KERNEL_OK")
</pallas_src>

<mosaic_0001>
module attributes {stable_mosaic.version = 11 : i64} {
  func.func @feedforward_kernel(%arg0: i32, %arg1: memref<1x4x256xf32, #tpu.memory_space<vmem>>, %arg2: memref<8x22xf32, #tpu.memory_space<vmem>>, %arg3: memref<1x4x256xf32, #tpu.memory_space<vmem>>) attributes {dimension_semantics = [#tpu.dimension_semantics<parallel>], iteration_bounds = array<i64: 2>, scalar_prefetch = 0 : i64, scratch_operands = 0 : i64, tpu.core_type = #tpu.core_type<tc>, window_params = [{transform_indices = @transform_0, window_bounds = array<i64: 1, 4, 256>}, {pipeline_mode = #tpu.pipeline_mode<synchronous>, transform_indices = @transform_1, window_bounds = array<i64: 8, 22>}, {transform_indices = @transform_2, window_bounds = array<i64: 1, 4, 256>}]} {
    %c0 = arith.constant 0 : index
    %c0_0 = arith.constant 0 : index
    %0 = vector.load %arg2[%c0, %c0_0] : memref<8x22xf32, #tpu.memory_space<vmem>>, vector<8x22xf32>
    %1 = vector.extract_strided_slice %0 {offsets = [0, 0], sizes = [4, 1], strides = [1, 1]} : vector<8x22xf32> to vector<4x1xf32>
    %2 = vector.extract_strided_slice %0 {offsets = [0, 1], sizes = [4, 1], strides = [1, 1]} : vector<8x22xf32> to vector<4x1xf32>
    %3 = vector.extract_strided_slice %0 {offsets = [0, 2], sizes = [8, 1], strides = [1, 1]} : vector<8x22xf32> to vector<8x1xf32>
    %4 = vector.extract_strided_slice %0 {offsets = [0, 3], sizes = [8, 1], strides = [1, 1]} : vector<8x22xf32> to vector<8x1xf32>
    %5 = vector.extract_strided_slice %0 {offsets = [0, 4], sizes = [4, 1], strides = [1, 1]} : vector<8x22xf32> to vector<4x1xf32>
    %6 = vector.extract_strided_slice %0 {offsets = [0, 5], sizes = [8, 9], strides = [1, 1]} : vector<8x22xf32> to vector<8x9xf32>
    %7 = vector.extract_strided_slice %0 {offsets = [0, 14], sizes = [8, 4], strides = [1, 1]} : vector<8x22xf32> to vector<8x4xf32>
    %8 = vector.extract_strided_slice %0 {offsets = [0, 18], sizes = [4, 4], strides = [1, 1]} : vector<8x22xf32> to vector<4x4xf32>
    %9 = tpu.iota {dimensions = array<i32: 1>} : vector<1x256xi32>
    %c15_i32 = arith.constant 15 : i32
    %10 = vector.broadcast %c15_i32 : i32 to vector<1x256xi32>
    %11 = arith.andi %9, %10 : vector<1x256xi32>
    %c1_i32 = arith.constant 1 : i32
    %12 = vector.broadcast %c1_i32 : i32 to vector<1x256xi32>
    %13 = arith.cmpi sge, %11, %12 : vector<1x256xi32>
    %c14_i32 = arith.constant 14 : i32
    %14 = vector.broadcast %c14_i32 : i32 to vector<1x256xi32>
    %15 = arith.cmpi sle, %11, %14 : vector<1x256xi32>
    %c16_i32 = arith.constant 16 : i32
    %16 = vector.broadcast %c16_i32 : i32 to vector<1x256xi32>
    %17 = arith.cmpi sge, %9, %16 : vector<1x256xi32>
    %c240_i32 = arith.constant 240 : i32
    %18 = vector.broadcast %c240_i32 : i32 to vector<1x256xi32>
    %19 = arith.cmpi slt, %9, %18 : vector<1x256xi32>
    %20 = arith.andi %13, %17 : vector<1x256xi1>
    %21 = arith.andi %15, %17 : vector<1x256xi1>
    %22 = arith.andi %13, %19 : vector<1x256xi1>
    %23 = arith.andi %15, %19 : vector<1x256xi1>
    %c0_i32 = arith.constant 0 : i32
    %c1_i32_1 = arith.constant 1 : i32
    %24 = arith.muli %c0_i32, %c1_i32_1 : i32
    %c0_i32_2 = arith.constant 0 : i32
    %25 = arith.addi %c0_i32_2, %24 : i32
    %26 = arith.index_cast %25 : i32 to index
    %c0_3 = arith.constant 0 : index
    %c0_4 = arith.constant 0 : index
    %27 = vector.load %arg1[%26, %c0_3, %c0_4] : memref<1x4x256xf32, #tpu.memory_space<vmem>>, vector<1x4x256xf32>
    %28 = vector.shape_cast %27 : vector<1x4x256xf32> to vector<4x256xf32>
    %29 = vector.extract_strided_slice %28 {offsets = [0, 0], sizes = [1, 256], strides = [1, 1]} : vector<4x256xf32> to vector<1x256xf32>
    %30 = vector.extract_strided_slice %28 {offsets = [1, 0], sizes = [1, 256], strides = [1, 1]} : vector<4x256xf32> to vector<1x256xf32>
    %31 = arith.addf %29, %30 : vector<1x256xf32>
    %32 = vector.extract_strided_slice %28 {offsets = [2, 0], sizes = [1, 256], strides = [1, 1]} : vector<4x256xf32> to vector<1x256xf32>
    %33 = arith.addf %31, %32 : vector<1x256xf32>
    %34 = vector.extract_strided_slice %28 {offsets = [3, 0], sizes = [1, 256], strides = [1, 1]} : vector<4x256xf32> to vector<1x256xf32>
    %35 = arith.addf %33, %34 : vector<1x256xf32>
    %cst = arith.constant 2.500000e-01 : f32
    %36 = vector.broadcast %cst : f32 to vector<1x256xf32>
    %37 = arith.mulf %35, %36 : vector<1x256xf32>
    %38 = vector.broadcast %37 : vector<1x256xf32> to vector<4x256xf32>
    %39 = arith.subf %28, %38 : vector<4x256xf32>
    %40 = arith.mulf %39, %39 : vector<4x256xf32>
    %41 = vector.extract_strided_slice %40 {offsets = [0, 0], sizes = [1, 256], strides = [1, 1]} : vector<4x256xf32> to vector<1x256xf32>
    %42 = vector.extract_strided_slice %40 {offsets = [1, 0], sizes = [1, 256], strides = [1, 1]} : vector<4x256xf32> to vector<1x256xf32>
    %43 = arith.addf %41, %42 : vector<1x256xf32>
    %44 = vector.extract_strided_slice %40 {offsets = [2, 0], sizes = [1, 256], strides = [1, 1]} : vector<4x256xf32> to vector<1x256xf32>
    %45 = arith.addf %43, %44 : vector<1x256xf32>
    %46 = vector.extract_strided_slice %40 {offsets = [3, 0], sizes = [1, 256], strides = [1, 1]} : vector<4x256xf32> to vector<1x256xf32>
    %47 = arith.addf %45, %46 : vector<1x256xf32>
    %cst_5 = arith.constant 2.500000e-01 : f32
    %48 = vector.broadcast %cst_5 : f32 to vector<1x256xf32>
    %49 = arith.mulf %47, %48 : vector<1x256xf32>
    %cst_6 = arith.constant 9.99999997E-7 : f32
    %50 = vector.broadcast %cst_6 : f32 to vector<1x256xf32>
    %51 = arith.addf %49, %50 : vector<1x256xf32>
    %52 = math.rsqrt %51 : vector<1x256xf32>
    %53 = vector.broadcast %52 : vector<1x256xf32> to vector<4x256xf32>
    %54 = arith.mulf %39, %53 : vector<4x256xf32>
    %55 = vector.broadcast %1 : vector<4x1xf32> to vector<4x256xf32>
    %56 = arith.mulf %54, %55 : vector<4x256xf32>
    %57 = vector.broadcast %2 : vector<4x1xf32> to vector<4x256xf32>
    %58 = arith.addf %56, %57 : vector<4x256xf32>
    %59 = vector.extract_strided_slice %7 {offsets = [0, 0], sizes = [8, 1], strides = [1, 1]} : vector<8x4xf32> to vector<8x1xf32>
    %60 = vector.extract_strided_slice %58 {offsets = [0, 0], sizes = [1, 256], strides = [1, 1]} : vector<4x256xf32> to vector<1x256xf32>
    %61 = vector.broadcast %59 : vector<8x1xf32> to vector<8x256xf32>
    %62 = vector.broadcast %60 : vector<1x256xf32> to vector<8x256xf32>
    %63 = arith.mulf %61, %62 : vector<8x256xf32>
    %64 = vector.extract_strided_slice %7 {offsets = [0, 1], sizes = [8, 1], strides = [1, 1]} : vector<8x4xf32> to vector<8x1xf32>
    %65 = vector.extract_strided_slice %58 {offsets = [1, 0], sizes = [1, 256], strides = [1, 1]} : vector<4x256xf32> to vector<1x256xf32>
    %66 = vector.broadcast %64 : vector<8x1xf32> to vector<8x256xf32>
    %67 = vector.broadcast %65 : vector<1x256xf32> to vector<8x256xf32>
    %68 = arith.mulf %66, %67 : vector<8x256xf32>
    %69 = arith.addf %63, %68 : vector<8x256xf32>
    %70 = vector.extract_strided_slice %7 {offsets = [0, 2], sizes = [8, 1], strides = [1, 1]} : vector<8x4xf32> to vector<8x1xf32>
    %71 = vector.extract_strided_slice %58 {offsets = [2, 0], sizes = [1, 256], strides = [1, 1]} : vector<4x256xf32> to vector<1x256xf32>
    %72 = vector.broadcast %70 : vector<8x1xf32> to vector<8x256xf32>
    %73 = vector.broadcast %71 : vector<1x256xf32> to vector<8x256xf32>
    %74 = arith.mulf %72, %73 : vector<8x256xf32>
    %75 = arith.addf %69, %74 : vector<8x256xf32>
    %76 = vector.extract_strided_slice %7 {offsets = [0, 3], sizes = [8, 1], strides = [1, 1]} : vector<8x4xf32> to vector<8x1xf32>
    %77 = vector.extract_strided_slice %58 {offsets = [3, 0], sizes = [1, 256], strides = [1, 1]} : vector<4x256xf32> to vector<1x256xf32>
    %78 = vector.broadcast %76 : vector<8x1xf32> to vector<8x256xf32>
    %79 = vector.broadcast %77 : vector<1x256xf32> to vector<8x256xf32>
    %80 = arith.mulf %78, %79 : vector<8x256xf32>
    %81 = arith.addf %75, %80 : vector<8x256xf32>
    %82 = vector.broadcast %3 : vector<8x1xf32> to vector<8x256xf32>
    %83 = arith.addf %81, %82 : vector<8x256xf32>
    %84 = vector.extract_strided_slice %6 {offsets = [0, 4], sizes = [8, 1], strides = [1, 1]} : vector<8x9xf32> to vector<8x1xf32>
    %85 = vector.broadcast %84 : vector<8x1xf32> to vector<8x256xf32>
    %86 = arith.mulf %83, %85 : vector<8x256xf32>
    %c17_i32 = arith.constant 17 : i32
    %87 = tpu.dynamic_rotate %83 by %c17_i32 dim 1 : vector<8x256xf32>, i32 -> vector<8x256xf32>
    %cst_7 = arith.constant 0.000000e+00 : f32
    %88 = vector.shape_cast %20 : vector<1x256xi1> to vector<1x256xi1>
    %89 = vector.broadcast %88 : vector<1x256xi1> to vector<8x256xi1>
    %90 = vector.broadcast %cst_7 : f32 to vector<8x256xf32>
    %91 = arith.select %89, %87, %90 : vector<8x256xi1>, vector<8x256xf32>
    %92 = vector.extract_strided_slice %6 {offsets = [0, 0], sizes = [8, 1], strides = [1, 1]} : vector<8x9xf32> to vector<8x1xf32>
    %93 = vector.broadcast %92 : vector<8x1xf32> to vector<8x256xf32>
    %94 = arith.mulf %91, %93 : vector<8x256xf32>
    %95 = arith.addf %86, %94 : vector<8x256xf32>
    %c16_i32_8 = arith.constant 16 : i32
    %96 = tpu.dynamic_rotate %83 by %c16_i32_8 dim 1 : vector<8x256xf32>, i32 -> vector<8x256xf32>
    %cst_9 = arith.constant 0.000000e+00 : f32
    %97 = vector.shape_cast %17 : vector<1x256xi1> to vector<1x256xi1>
    %98 = vector.broadcast %97 : vector<1x256xi1> to vector<8x256xi1>
    %99 = vector.broadcast %cst_9 : f32 to vector<8x256xf32>
    %100 = arith.select %98, %96, %99 : vector<8x256xi1>, vector<8x256xf32>
    %101 = vector.extract_strided_slice %6 {offsets = [0, 1], sizes = [8, 1], strides = [1, 1]} : vector<8x9xf32> to vector<8x1xf32>
    %102 = vector.broadcast %101 : vector<8x1xf32> to vector<8x256xf32>
    %103 = arith.mulf %100, %102 : vector<8x256xf32>
    %104 = arith.addf %95, %103 : vector<8x256xf32>
    %c15_i32_10 = arith.constant 15 : i32
    %105 = tpu.dynamic_rotate %83 by %c15_i32_10 dim 1 : vector<8x256xf32>, i32 -> vector<8x256xf32>
    %cst_11 = arith.constant 0.000000e+00 : f32
    %106 = vector.shape_cast %21 : vector<1x256xi1> to vector<1x256xi1>
    %107 = vector.broadcast %106 : vector<1x256xi1> to vector<8x256xi1>
    %108 = vector.broadcast %cst_11 : f32 to vector<8x256xf32>
    %109 = arith.select %107, %105, %108 : vector<8x256xi1>, vector<8x256xf32>
    %110 = vector.extract_strided_slice %6 {offsets = [0, 2], sizes = [8, 1], strides = [1, 1]} : vector<8x9xf32> to vector<8x1xf32>
    %111 = vector.broadcast %110 : vector<8x1xf32> to vector<8x256xf32>
    %112 = arith.mulf %109, %111 : vector<8x256xf32>
    %113 = arith.addf %104, %112 : vector<8x256xf32>
    %c1_i32_12 = arith.constant 1 : i32
    %114 = tpu.dynamic_rotate %83 by %c1_i32_12 dim 1 : vector<8x256xf32>, i32 -> vector<8x256xf32>
    %cst_13 = arith.constant 0.000000e+00 : f32
    %115 = vector.shape_cast %13 : vector<1x256xi1> to vector<1x256xi1>
    %116 = vector.broadcast %115 : vector<1x256xi1> to vector<8x256xi1>
    %117 = vector.broadcast %cst_13 : f32 to vector<8x256xf32>
    %118 = arith.select %116, %114, %117 : vector<8x256xi1>, vector<8x256xf32>
    %119 = vector.extract_strided_slice %6 {offsets = [0, 3], sizes = [8, 1], strides = [1, 1]} : vector<8x9xf32> to vector<8x1xf32>
    %120 = vector.broadcast %119 : vector<8x1xf32> to vector<8x256xf32>
    %121 = arith.mulf %118, %120 : vector<8x256xf32>
    %122 = arith.addf %113, %121 : vector<8x256xf32>
    %c255_i32 = arith.constant 255 : i32
    %123 = tpu.dynamic_rotate %83 by %c255_i32 dim 1 : vector<8x256xf32>, i32 -> vector<8x256xf32>
    %cst_14 = arith.constant 0.000000e+00 : f32
    %124 = vector.shape_cast %15 : vector<1x256xi1> to vector<1x256xi1>
    %125 = vector.broadcast %124 : vector<1x256xi1> to vector<8x256xi1>
    %126 = vector.broadcast %cst_14 : f32 to vector<8x256xf32>
    %127 = arith.select %125, %123, %126 : vector<8x256xi1>, vector<8x256xf32>
    %128 = vector.extract_strided_slice %6 {offsets = [0, 5], sizes = [8, 1], strides = [1, 1]} : vector<8x9xf32> to vector<8x1xf32>
    %129 = vector.broadcast %128 : vector<8x1xf32> to vector<8x256xf32>
    %130 = arith.mulf %127, %129 : vector<8x256xf32>
    %131 = arith.addf %122, %130 : vector<8x256xf32>
    %c241_i32 = arith.constant 241 : i32
    %132 = tpu.dynamic_rotate %83 by %c241_i32 dim 1 : vector<8x256xf32>, i32 -> vector<8x256xf32>
    %cst_15 = arith.constant 0.000000e+00 : f32
    %133 = vector.shape_cast %22 : vector<1x256xi1> to vector<1x256xi1>
    %134 = vector.broadcast %133 : vector<1x256xi1> to vector<8x256xi1>
    %135 = vector.broadcast %cst_15 : f32 to vector<8x256xf32>
    %136 = arith.select %134, %132, %135 : vector<8x256xi1>, vector<8x256xf32>
    %137 = vector.extract_strided_slice %6 {offsets = [0, 6], sizes = [8, 1], strides = [1, 1]} : vector<8x9xf32> to vector<8x1xf32>
    %138 = vector.broadcast %137 : vector<8x1xf32> to vector<8x256xf32>
    %139 = arith.mulf %136, %138 : vector<8x256xf32>
    %140 = arith.addf %131, %139 : vector<8x256xf32>
    %c240_i32_16 = arith.constant 240 : i32
    %141 = tpu.dynamic_rotate %83 by %c240_i32_16 dim 1 : vector<8x256xf32>, i32 -> vector<8x256xf32>
    %cst_17 = arith.constant 0.000000e+00 : f32
    %142 = vector.shape_cast %19 : vector<1x256xi1> to vector<1x256xi1>
    %143 = vector.broadcast %142 : vector<1x256xi1> to vector<8x256xi1>
    %144 = vector.broadcast %cst_17 : f32 to vector<8x256xf32>
    %145 = arith.select %143, %141, %144 : vector<8x256xi1>, vector<8x256xf32>
    %146 = vector.extract_strided_slice %6 {offsets = [0, 7], sizes = [8, 1], strides = [1, 1]} : vector<8x9xf32> to vector<8x1xf32>
    %147 = vector.broadcast %146 : vector<8x1xf32> to vector<8x256xf32>
    %148 = arith.mulf %145, %147 : vector<8x256xf32>
    %149 = arith.addf %140, %148 : vector<8x256xf32>
    %c239_i32 = arith.constant 239 : i32
    %150 = tpu.dynamic_rotate %83 by %c239_i32 dim 1 : vector<8x256xf32>, i32 -> vector<8x256xf32>
    %cst_18 = arith.constant 0.000000e+00 : f32
    %151 = vector.shape_cast %23 : vector<1x256xi1> to vector<1x256xi1>
    %152 = vector.broadcast %151 : vector<1x256xi1> to vector<8x256xi1>
    %153 = vector.broadcast %cst_18 : f32 to vector<8x256xf32>
    %154 = arith.select %152, %150, %153 : vector<8x256xi1>, vector<8x256xf32>
    %155 = vector.extract_strided_slice %6 {offsets = [0, 8], sizes = [8, 1], strides = [1, 1]} : vector<8x9xf32> to vector<8x1xf32>
    %156 = vector.broadcast %155 : vector<8x1xf32> to vector<8x256xf32>
    %157 = arith.mulf %154, %156 : vector<8x256xf32>
    %158 = arith.addf %149, %157 : vector<8x256xf32>
    %159 = vector.broadcast %4 : vector<8x1xf32> to vector<8x256xf32>
    %160 = arith.addf %158, %159 : vector<8x256xf32>
    %161 = vector.extract_strided_slice %160 {offsets = [0, 0], sizes = [4, 256], strides = [1, 1]} : vector<8x256xf32> to vector<4x256xf32>
    %cst_19 = arith.constant 5.000000e-01 : f32
    %162 = vector.broadcast %cst_19 : f32 to vector<4x256xf32>
    %163 = arith.mulf %162, %161 : vector<4x256xf32>
    %cst_20 = arith.constant 0.707106769 : f32
    %164 = vector.broadcast %cst_20 : f32 to vector<4x256xf32>
    %165 = arith.mulf %161, %164 : vector<4x256xf32>
    %cst_21 = arith.constant 0.000000e+00 : f32
    %166 = vector.broadcast %cst_21 : f32 to vector<4x256xf32>
    %167 = arith.cmpf oge, %165, %166 : vector<4x256xf32>
    %cst_22 = arith.constant 1.000000e+00 : f32
    %cst_23 = arith.constant -1.000000e+00 : f32
    %168 = vector.broadcast %cst_22 : f32 to vector<4x256xf32>
    %169 = vector.broadcast %cst_23 : f32 to vector<4x256xf32>
    %170 = arith.select %167, %168, %169 : vector<4x256xi1>, vector<4x256xf32>
    %171 = math.absf %165 : vector<4x256xf32>
    %cst_24 = arith.constant 0.327591091 : f32
    %172 = vector.broadcast %cst_24 : f32 to vector<4x256xf32>
    %173 = arith.mulf %172, %171 : vector<4x256xf32>
    %cst_25 = arith.constant 1.000000e+00 : f32
    %174 = vector.broadcast %cst_25 : f32 to vector<4x256xf32>
    %175 = arith.addf %174, %173 : vector<4x256xf32>
    %176 = tpu.reciprocal %175 {approx = true} : vector<4x256xf32> -> vector<4x256xf32>
    %cst_26 = arith.constant 1.06140542 : f32
    %177 = vector.broadcast %cst_26 : f32 to vector<4x256xf32>
    %178 = arith.mulf %177, %176 : vector<4x256xf32>
    %cst_27 = arith.constant -1.45315206 : f32
    %179 = vector.broadcast %cst_27 : f32 to vector<4x256xf32>
    %180 = arith.addf %178, %179 : vector<4x256xf32>
    %181 = arith.mulf %180, %176 : vector<4x256xf32>
    %cst_28 = arith.constant 1.42141378 : f32
    %182 = vector.broadcast %cst_28 : f32 to vector<4x256xf32>
    %183 = arith.addf %181, %182 : vector<4x256xf32>
    %184 = arith.mulf %183, %176 : vector<4x256xf32>
    %cst_29 = arith.constant -0.284496725 : f32
    %185 = vector.broadcast %cst_29 : f32 to vector<4x256xf32>
    %186 = arith.addf %184, %185 : vector<4x256xf32>
    %187 = arith.mulf %186, %176 : vector<4x256xf32>
    %cst_30 = arith.constant 0.254829586 : f32
    %188 = vector.broadcast %cst_30 : f32 to vector<4x256xf32>
    %189 = arith.addf %187, %188 : vector<4x256xf32>
    %190 = arith.mulf %189, %176 : vector<4x256xf32>
    %cst_31 = arith.constant 0.000000e+00 : f32
    %191 = vector.broadcast %cst_31 : f32 to vector<4x256xf32>
    %192 = arith.subf %191, %171 : vector<4x256xf32>
    %193 = arith.mulf %192, %171 : vector<4x256xf32>
    %194 = math.exp %193 : vector<4x256xf32>
    %195 = arith.mulf %190, %194 : vector<4x256xf32>
    %cst_32 = arith.constant 1.000000e+00 : f32
    %196 = vector.broadcast %cst_32 : f32 to vector<4x256xf32>
    %197 = arith.subf %196, %195 : vector<4x256xf32>
    %198 = arith.mulf %170, %197 : vector<4x256xf32>
    %cst_33 = arith.constant 1.000000e+00 : f32
    %199 = vector.broadcast %cst_33 : f32 to vector<4x256xf32>
    %200 = arith.addf %199, %198 : vector<4x256xf32>
    %201 = arith.mulf %163, %200 : vector<4x256xf32>
    %202 = vector.extract_strided_slice %160 {offsets = [4, 0], sizes = [4, 256], strides = [1, 1]} : vector<8x256xf32> to vector<4x256xf32>
    %203 = arith.mulf %201, %202 : vector<4x256xf32>
    %204 = vector.extract_strided_slice %8 {offsets = [0, 0], sizes = [4, 1], strides = [1, 1]} : vector<4x4xf32> to vector<4x1xf32>
    %205 = vector.extract_strided_slice %203 {offsets = [0, 0], sizes = [1, 256], strides = [1, 1]} : vector<4x256xf32> to vector<1x256xf32>
    %206 = vector.broadcast %204 : vector<4x1xf32> to vector<4x256xf32>
    %207 = vector.broadcast %205 : vector<1x256xf32> to vector<4x256xf32>
    %208 = arith.mulf %206, %207 : vector<4x256xf32>
    %209 = vector.extract_strided_slice %8 {offsets = [0, 1], sizes = [4, 1], strides = [1, 1]} : vector<4x4xf32> to vector<4x1xf32>
    %210 = vector.extract_strided_slice %203 {offsets = [1, 0], sizes = [1, 256], strides = [1, 1]} : vector<4x256xf32> to vector<1x256xf32>
    %211 = vector.broadcast %209 : vector<4x1xf32> to vector<4x256xf32>
    %212 = vector.broadcast %210 : vector<1x256xf32> to vector<4x256xf32>
    %213 = arith.mulf %211, %212 : vector<4x256xf32>
    %214 = arith.addf %208, %213 : vector<4x256xf32>
    %215 = vector.extract_strided_slice %8 {offsets = [0, 2], sizes = [4, 1], strides = [1, 1]} : vector<4x4xf32> to vector<4x1xf32>
    %216 = vector.extract_strided_slice %203 {offsets = [2, 0], sizes = [1, 256], strides = [1, 1]} : vector<4x256xf32> to vector<1x256xf32>
    %217 = vector.broadcast %215 : vector<4x1xf32> to vector<4x256xf32>
    %218 = vector.broadcast %216 : vector<1x256xf32> to vector<4x256xf32>
    %219 = arith.mulf %217, %218 : vector<4x256xf32>
    %220 = arith.addf %214, %219 : vector<4x256xf32>
    %221 = vector.extract_strided_slice %8 {offsets = [0, 3], sizes = [4, 1], strides = [1, 1]} : vector<4x4xf32> to vector<4x1xf32>
    %222 = vector.extract_strided_slice %203 {offsets = [3, 0], sizes = [1, 256], strides = [1, 1]} : vector<4x256xf32> to vector<1x256xf32>
    %223 = vector.broadcast %221 : vector<4x1xf32> to vector<4x256xf32>
    %224 = vector.broadcast %222 : vector<1x256xf32> to vector<4x256xf32>
    %225 = arith.mulf %223, %224 : vector<4x256xf32>
    %226 = arith.addf %220, %225 : vector<4x256xf32>
    %227 = vector.broadcast %5 : vector<4x1xf32> to vector<4x256xf32>
    %228 = arith.addf %226, %227 : vector<4x256xf32>
    %229 = arith.addf %228, %28 : vector<4x256xf32>
    %230 = arith.index_cast %25 : i32 to index
    %c0_34 = arith.constant 0 : index
    %c0_35 = arith.constant 0 : index
    %231 = vector.load %arg3[%230, %c0_34, %c0_35] : memref<1x4x256xf32, #tpu.memory_space<vmem>>, vector<1x4x256xf32>
    %232 = vector.shape_cast %231 : vector<1x4x256xf32> to vector<4x256xf32>
    %233 = vector.shape_cast %229 : vector<4x256xf32> to vector<1x4x256xf32>
    tpu.vector_store %arg3[%230, %c0_34, %c0_35], %233 {strides = array<i32>} : memref<1x4x256xf32, #tpu.memory_space<vmem>>, vector<1x4x256xf32>,
    %c1_i32_36 = arith.constant 1 : i32
    return
  }
  func.func @transform_0(%arg0: i32) -> (i32, i32, i32) {
    %c0_i32 = arith.constant 0 : i32
    %c0_i32_0 = arith.constant 0 : i32
    %c0_i32_1 = arith.constant 0 : i32
    return %arg0, %c0_i32, %c0_i32_0 : i32, i32, i32
  }
  func.func @transform_1(%arg0: i32) -> (i32, i32) {
    %c0_i32 = arith.constant 0 : i32
    %c0_i32_0 = arith.constant 0 : i32
    %c0_i32_1 = arith.constant 0 : i32
    return %c0_i32, %c0_i32_0 : i32, i32
  }
  func.func @transform_2(%arg0: i32) -> (i32, i32, i32) {
    %c0_i32 = arith.constant 0 : i32
    %c0_i32_0 = arith.constant 0 : i32
    %c0_i32_1 = arith.constant 0 : i32
    return %arg0, %c0_i32, %c0_i32_0 : i32, i32, i32
  }
}

</mosaic_0001>

<bundles_post_ra>
// kernel: tpu_custom_call.1
= control target key start
LH: loop header
LB: loop body
LE: loop exit
PB: predicated region body
PF: predicated region fallthrough
CT: control target
= control target key end

     0   :  { %7 = vsyncpa [#allocation3], 0  ;;  %s1287_s0 = inlined_call_operand.hbm [shape: f32[2,4,256], index: 0, kind: input, shape index: {}, may-alias: {0,2}]   ;;  %s1288_s1 = inlined_call_operand.vmem [shape: f32[8,22], index: 1, kind: input, shape index: {}]   ;;  %s1289_s2 = inlined_call_operand.hbm [shape: f32[2,4,256], index: 2, kind: output, shape index: {}, may-alias: {0,2}]  }
   0x1   :  { %9 = vsyncpa [#allocation3 + $0x1], 0 }
   0x2   :  { %10 = vsyncpa [#allocation4], 0 }
   0x3   :  { %12 = vsyncpa [#allocation4 + $0x1], 0  ;;  %s993_s9 = smov 0   ;;  %s995_s10 = smov 0  }
   0x4   :  { %s997_s11 = smov 0   ;;  %s999_s12 = smov 0  }
   0x5 LB: > { %s1014_s13 = sadd.s32 4294967295, %s944_s12   ;;  %s716_s14 = sadd.s32 4294967294, %s944_s12   ;;  %s944_s12 = sphi %s999_s12, %s1311_s12   ;;  %s940_s11 = sphi %s997_s11, %s1310_s11   ;;  %s936_s10 = sphi %s995_s10, %s1309_s10   ;;  %s932_s9 = sphi %s993_s9, %s1308_s9  }
   0x6   : > { %s1018_s15 = sadd.s32 1, %s944_s12   ;;  %s25_s16 = sadd.s32 1, %s940_s11 }
   0x7   : > { %s22_s17 = ssub.s32 %s944_s12, %s1018_s15  ;;  %p32_p0 = scmp.ne.s32.totalorder %s940_s11, %s936_s10 }
   0x8   : > { %p23_p1 = scmp.eq.s32.totalorder %s22_s17, 0  ;;  %p33_p2 = scmp.eq.s32.totalorder %s944_s12, 0 }
   0x9   : > { %p38_p3 = scmp.ne.s32.totalorder %s936_s10, %s932_s9  ;;  %p39_p4 = scmp.eq.s32.totalorder %s1014_s13, 0 }
   0xa   : > { %s1030_s18 = scalar_select %p23_p1, %s940_s11, %s25_s16  }
   0xb   : > { %p1032_p5 = por %p33_p2, %p32_p0  ;;  %p1036_p6 = por %p39_p4, %p38_p3 }
   0xc   : > { %p83_p7 = scmp.eq.s32.totalorder %s1014_s13, 1  ;;  %p89_p8 = scmp.eq.s32.totalorder %s716_s14, 1 }
   0xd   : > { %p750_p10 = scmp.lt.s32.totalorder %s944_s12, 2  ;;  %s112_s23 = sand.u32 1, %s940_s11  }
   0xe   : > { %p1043_p11 = por %p83_p7, %p32_p0  ;;  %p1047_p12 = por %p89_p8, %p38_p3 }
   0xf   : > { %s736_s24 = sshll.u32 %s944_s12, 3  ;;  %s719_s25 = sshll.u32 %s112_s23, 3 }
  0x10   : > { %s121_s28 = scalar_lea.hbm %s1287_s0, %s736_s24  ;;  %s116_s30 = scalar_lea.vmem [#allocation2], %s719_s25 }
  0x11   : > { %s123_s29 = sshll.u32 %s121_s28, 4  ;;  %s125_s3 = sshll.u32 %s116_s30, 4  ;;  %s124_s29 = int_to_ptr.hbm [resolvable:$true] %s123_s29  ;;  %s126_s3 = int_to_ptr.vmem [resolvable:$true] %s125_s3 }
  0x12   : > { %p1058_p13 = pnand %p750_p10, %p1032_p5  ;;  %p722_p0 = scmp.ge.s32.totalorder %s944_s12, 1 }
  0x13   : > { %p130_p1 = scmp.lt.s32.totalorder %s944_s12, 3  ;;  %s113_s5 = scalar_lea.sflag [#allocation3], %s112_s23 }
  0x14   : > { %s848_s6 = sshra.s32 %s124_s29, 4  ;;  %p852_p3 = pneg %p1058_p13  ;;  %s849_s6 = int_to_ptr.hbm [resolvable:$true] %s848_s6 }
  0x15   : > { %s850_s7 = scalar_lea.hbm %s849_s6, 8  ;;  %s855_s16 = scalar_lea.hbm %s1287_s0, 16 }
  0x16   : > { %p851_p2 = scmp.ne.s32.totalorder %s849_s6, %s850_s7  ;;  %p856_p5 = scmp.lt.s32.totalorder %s849_s6, %s1287_s0 }
  0x17   : > { %p857_p8 = scmp.lt.s32.totalorder %s855_s16, %s850_s7 }
  0x18   : > { %p853_p4 = pnand %p852_p3, %p851_p2 }
  0x19   : > { %p858_p10 = por %p857_p8, %p856_p5 }
  0x1a   : > { %p854_p7 = pneg %p853_p4 }
  0x1c   : > { %p859_p9 = pnand %p858_p10, %p854_p7 }
  0x1e   : > { %862 = shalt.err (!%p859_p9)
}
  0x1f   : > { %745 = dma.hbm_to_vmem [thread:$0]  (!%p1058_p13), %s124_s29, 128, %s126_s3, %s113_s5  }
  0x20   : > { %p131_p2 = pnand %p722_p0, %p130_p1 }
  0x21   : > { %s1079_s23 = sand.u32 (!%p131_p2), 1, %s936_s10  }
  0x22   : > { %134 = sbr.rel (%p131_p2) target bundleno = 431 (0x1af), region = 28  ;;  %s723_s24 = sshll.u32 (!%p131_p2), %s1079_s23, 3 }
  0x23   : > { %s137_s25 = scalar_lea.sflag (!%p131_p2), [#allocation3], %s1079_s23  ;;  %s140_s26 = scalar_lea.vmem (!%p131_p2), [#allocation2], %s723_s24 }
  0x27   : > { %923 = dma.done.wait (%p1036_p6), %s137_s25, 128  }
  0x28   : > { %925 = vsyncadd (%p1036_p6), %s137_s25, 4294967168  ;;  %v946_v0 = vmov 0   ;;  %v947_v1 = vmov 14   ;;  %v948_v2 = vmov 16   ;;  %v1092_v3 = vld [vmem:[%s1288_s1] sm:$0xff]  ;;  %v184_v4 = vld [vmem:[%s140_s26] sm:$0xff] }
  0x29   : > { %816 = vset.pattern.permute.xlu0 %v946_v0  ;;  %818 = vset.pattern.permute.xlu1 %v947_v1  ;;  %616 = vst [vmem:[#allocation1] ss:$2 sm:$0xff] %v184_v4  ;;  %v725_v5 = vrot.slane %v184_v4, 9  ;;  %v949_v6 = vmov 1   ;;  %v950_v7 = vmov 15   ;;  %v951_v8 = vmov 17  }
  0x2a   : > { %820 = vset.pattern.permute.xlu2 %v948_v2  ;;  %254 = vperm.xlu0 %816, %v1092_v3   ;;  %v726_v10 = vrot.slane %v184_v4, 10  ;;  %v727_v12 = vrot.slane %v184_v4, 11  ;;  %v952_v13 = vmov 2   ;;  %v953_v15 = vmov 9   ;;  %s957_s20 = smov 17   ;;  %s959_s29 = smov 16  }
  0x2b   : > { %272 = vperm.xlu1 %818, %v1092_v3   ;;  %299 = vperm.xlu2 %820, %v1092_v3   ;;  %v189_v9 = vadd.f32 %v725_v5, %v184_v4  ;;  %vm209_vm0 = vcmask 1043456   ;;  %v954_v43 = vmov 839922192   ;;  %v955_v59 = vmov 5   ;;  %s961_s30 = smov 15   ;;  %s963_s3 = smov 1  }
  0x2c   : > { %v257_v44 = vunpack.c.l.s4 %v954_v43  ;;  %s966_s4 = smov 127   ;;  %s969_s5 = smov 113   ;;  %v975_v43 = vmov 19  }
  0x2d   : > { %v193_v11 = vadd.f32 %v726_v10, %v189_v9  ;;  %s970_s6 = smov 112   ;;  %s972_s7 = smov 111  }
  0x2e   : > { %v258_v48 = vunpack.c.0.s8 %v257_v44  ;;  %s737_s8 = sshll.u32 %s1014_s13, 3  ;;  %s161_s19 = scalar_lea.vmem [#allocation5], %s723_s24 }
  0x2f   : > { %v197_v14 = vadd.f32 %v727_v12, %v193_v11  ;;  %s641_s17 = scalar_lea.hbm %s1289_s2, %s737_s8  ;;  %s643_s25 = sshll.u32 %s161_s19, 4  ;;  %s644_s25 = int_to_ptr.vmem [resolvable:$true] %s643_s25 }
  0x30   : > { %s645_s26 = sshll.u32 %s641_s17, 4  ;;  %s630_s13 = scalar_lea.sflag [#allocation4], %s1079_s23  ;;  %s646_s26 = int_to_ptr.hbm [resolvable:$true] %s645_s26 }
  0x31   : > { %v198_v16 = vmul.f32 0.25, %v197_v14  ;;  %s892_s27 = sshra.s32 %s646_s26, 4  ;;  %s898_s24 = scalar_lea.hbm %s1289_s2, 16  ;;  %s893_s27 = int_to_ptr.hbm [resolvable:$true] %s892_s27 }
  0x32   : > { %817 = vset.pattern.permute.xlu0 %v949_v6  ;;  %s894_s28 = scalar_lea.hbm %s893_s27, 8  ;;  %p899_p0 = scmp.lt.s32.totalorder %s893_s27, %s1289_s2 }
  0x33   : > { %819 = vset.pattern.permute.xlu1 %v950_v7  ;;  %263 = vperm.xlu0 %817, %v1092_v3   ;;  %v201_v17 = vperm.slane %v198_v16, 4  ;;  %v200_v18 = vperm.slane %v198_v16, 0  ;;  %p895_p6 = scmp.ne.s32.totalorder %s893_s27, %s894_s28  ;;  %p900_p1 = scmp.lt.s32.totalorder %s898_s24, %s894_s28 }
  0x34   : > { %285 = vperm.xlu1 %819, %v1092_v3   ;;  %821 = vset.pattern.permute.xlu2 %v951_v8 }
  0x35   : > { %313 = vperm.xlu2 %821, %v1092_v3   ;;  %v205_v19 = vperm.slane %v201_v17, 0  ;;  %v204_v20 = vperm.slane %v200_v18, 0  ;;  %p896_p9 = pnand %p895_p6, %p1043_p11  ;;  %p901_p3 = por %p900_p1, %p899_p0 }
  0x37   : > { %v208_v21 = vrot.slane %v205_v19, 4  ;;  %p897_p13 = pneg %p896_p9 }
  0x39   : > { %v210_v22 = vsel %vm209_vm0, %v204_v20, %v208_v21  ;;  %p902_p4 = pnand %p901_p3, %p897_p13 }
  0x3a   : > { %v212_v23 = vsub.f32 %v184_v4, %v210_v22 }
  0x3c   : > { %822 = vset.pattern.permute.xlu1 %v952_v13  ;;  %v213_v24 = vmul.f32 %v212_v23, %v212_v23 }
  0x3d   : > { %327 = vperm.xlu1 %822, %v1092_v3   ;;  %823 = vset.pattern.permute.xlu2 %v953_v15 }
  0x3e   : > { %333 = vperm.xlu2 %823, %v1092_v3   ;;  %v728_v25 = vrot.slane %v213_v24, 9  ;;  %v729_v27 = vrot.slane %v213_v24, 10  ;;  %v730_v29 = vrot.slane %v213_v24, 11 }
  0x40   : > { %v218_v26 = vadd.f32 %v728_v25, %v213_v24 }
  0x42   : > { %v222_v28 = vadd.f32 %v729_v27, %v218_v26  ;;  %v956_v26 = vmov 6  }
  0x44   : > { %v226_v30 = vadd.f32 %v730_v29, %v222_v28 }
  0x46   : > { %v227_v31 = vmul.f32 0.25, %v226_v30  ;;  %824 = vset.pattern.permute.xlu2 %v955_v59 }
  0x47   : > { %352 = vperm.xlu2 %824, %v1092_v3  }
  0x48   : > { %v228_v32 = vadd.f32 1e-06, %v227_v31 }
  0x4a   : > { %838 = vrsqrt.f32 %v228_v32  ;;  %vm235_vm1 = vweird.f32 %v228_v32 }
  0x4f   : > { %825 = vset.pattern.permute.xlu2 %v956_v26 }
  0x50   : > { %v839_v33 = vpop.eup %838  ;;  %373 = vperm.xlu2 %825, %v1092_v3  }
  0x51   : > { %v230_v34 = vmul.f32 %v839_v33, %v228_v32  ;;  %vm236_vm2 = vweird.f32 %v839_v33  ;;  %v958_v32 = vmov 7  }
  0x52   : > { %vm237_vm3 = vmor %vm235_vm1, %vm236_vm2 }
  0x53   : > { %v231_v35 = vmul.f32 %v839_v33, %v230_v34  ;;  %v962_v34 = vmov 10  }
  0x55   : > { %v232_v36 = vmul.f32 0.5, %v231_v35  ;;  %v964_v35 = vmov 3  }
  0x56   : > { %832 = vset.pattern.permute.xlu0 %v964_v35 }
  0x57   : > { %v233_v37 = vsub.f32 1.5, %v232_v36  ;;  %v965_v36 = vmov 11  }
  0x58   : > { %826 = vset.pattern.permute.xlu2 %v958_v32 }
  0x59   : > { %v234_v38 = vmul.f32 %v839_v33, %v233_v37  ;;  %394 = vperm.xlu2 %826, %v1092_v3   ;;  %v967_v37 = vmov 18  }
  0x5a   : > { %833 = vset.pattern.permute.xlu1 %v967_v37 }
  0x5b   : > { %v238_v39 = vsel %vm237_vm3, %v839_v33, %v234_v38  ;;  %v960_v33 = vmov 8   ;;  %v968_v38 = vmov 12  }
  0x5c   : > { %v241_v40 = vperm.slane %v238_v39, 4  ;;  %v240_v41 = vperm.slane %v238_v39, 0  ;;  %v971_v39 = vmov 13  }
  0x5e   : > { %v245_v42 = vperm.slane %v241_v40, 0  ;;  %v244_v45 = vperm.slane %v240_v41, 0  ;;  %v973_v40 = vmov 20   ;;  %v974_v41 = vmov 4  }
  0x60   : > { %v248_v46 = vrot.slane %v245_v42, 4 }
  0x61   : > { %827 = vset.pattern.permute.xlu2 %v960_v33 }
  0x62   : > { %v249_v49 = vsel %vm209_vm0, %v244_v45, %v248_v46  ;;  %415 = vperm.xlu2 %827, %v1092_v3   ;;  %v976_v45 = vmov 21  }
  0x63   : > { %v251_v51 = vmul.f32 %v249_v49, %v212_v23 }
  0x6a   : > { %828 = vset.pattern.permute.xlu2 %v962_v34 }
  0x6b   : > { %436 = vperm.xlu2 %828, %v1092_v3  }
  0x73   : > { %829 = vset.pattern.permute.xlu2 %v965_v36 }
  0x74   : > { %457 = vperm.xlu2 %829, %v1092_v3  }
  0x7c   : > { %830 = vset.pattern.permute.xlu2 %v968_v38 }
  0x7d   : > { %478 = vperm.xlu2 %830, %v1092_v3  }
  0x85   : > { %v300_v53 = vpop.permute.xlu2 %299  ;;  %831 = vset.pattern.permute.xlu2 %v971_v39 }
  0x86   : > { %499 = vperm.xlu2 %831, %v1092_v3  }
  0x8e   : > { %834 = vset.pattern.permute.xlu2 %v975_v43 }
  0x8f   : > { %v314_v17 = vpop.permute.xlu2 %313  ;;  %581 = vperm.xlu2 %834, %v1092_v3  }
  0x97   : > { %836 = vset.pattern.permute.xlu2 %v976_v45 }
  0x98   : > { %v334_v42 = vpop.permute.xlu2 %333  ;;  %601 = vperm.xlu2 %836, %v1092_v3  }
  0x9c   : > { %v255_v47 = vpop.permute.xlu0 %254 }
  0x9d   : > { %v273_v50 = vpop.permute.xlu1 %272  ;;  %v259_v52 = vperm.slane %v255_v47, %v258_v48 }
  0x9f   : > { %v261_v55 = vmul.f32 %v259_v52, %v251_v51 }
  0xa1   : > { %v353_v44 = vpop.permute.xlu2 %352 }
  0xa5   : > { %v264_v54 = vpop.permute.xlu0 %263 }
  0xa6   : > { %v268_v56 = vperm.slane %v264_v54, %v258_v48  ;;  %v286_v58 = vpop.permute.xlu1 %285 }
  0xa8   : > { %v270_v57 = vadd.f32 %v268_v56, %v261_v55  ;;  %v163_v55 = vlaneseq }
  0xaa   : > { %v276_v60 = vperm.slane %v270_v57, 0  ;;  %v277_v61 = vperm.slane %v270_v57, 4  ;;  %v288_v62 = vperm.slane %v270_v57, 1  ;;  %v289_v63 = vperm.slane %v270_v57, 5  ;;  %v374_v46 = vpop.permute.xlu2 %373 }
  0xab   : > { %v316_v0 = vperm.slane %v270_v57, 3  ;;  %v317_v1 = vperm.slane %v270_v57, 7  ;;  %v302_v2 = vperm.slane %v270_v57, 2  ;;  %v303_v4 = vperm.slane %v270_v57, 6 }
  0xac   : > { %v280_v5 = vperm.slane %v276_v60, 0  ;;  %v281_v6 = vperm.slane %v277_v61, 0  ;;  %v292_v7 = vperm.slane %v288_v62, 1  ;;  %v293_v8 = vperm.slane %v289_v63, 1 }
  0xad   : > { %v320_v9 = vperm.slane %v316_v0, 3  ;;  %v321_v10 = vperm.slane %v317_v1, 3  ;;  %v306_v11 = vperm.slane %v302_v2, 2  ;;  %v307_v12 = vperm.slane %v303_v4, 2 }
  0xae   : > { %v282_v13 = vmul.f32 %v280_v5, %v273_v50  ;;  %v283_v14 = vmul.f32 %v281_v6, %v273_v50  ;;  %v294_v15 = vmul.f32 %v292_v7, %v286_v58  ;;  %v295_v16 = vmul.f32 %v293_v8, %v286_v58 }
  0xaf   : > { %v308_v18 = vmul.f32 %v306_v11, %v300_v53  ;;  %v309_v21 = vmul.f32 %v307_v12, %v300_v53  ;;  %v322_v22 = vmul.f32 %v320_v9, %v314_v17  ;;  %v323_v23 = vmul.f32 %v321_v10, %v314_v17  ;;  %v328_v27 = vpop.permute.xlu1 %327 }
  0xb0   : > { %v296_v19 = vadd.f32 %v294_v15, %v282_v13  ;;  %v297_v20 = vadd.f32 %v295_v16, %v283_v14  ;;  %v1140_v56 = vand.u32 127, %v163_v55 }
  0xb2   : > { %v310_v24 = vadd.f32 %v308_v18, %v296_v19  ;;  %v311_v25 = vadd.f32 %v309_v21, %v297_v20  ;;  %v1145_v60 = vadd.s32 128, %v1140_v56  ;;  %vm172_vm5 = vcmp.ge.s32.totalorder %v1140_v56, 16 }
  0xb3   : > { %v395_v49 = vpop.permute.xlu2 %394  ;;  %vm342_vm6 = vcmp.lt.s32.totalorder %v1140_v56, 17  ;;  %vm363_vm7 = vcmp.lt.s32.totalorder %v1140_v56, 16  ;;  %vm384_vm11 = vcmp.lt.s32.totalorder %v1140_v56, 15  ;;  %vm405_vm13 = vcmp.lt.s32.totalorder %v1140_v56, 1 }
  0xb4   : > { %v324_v28 = vadd.f32 %v322_v22, %v310_v24  ;;  %v325_v29 = vadd.f32 %v323_v23, %v311_v25  ;;  %v167_v61 = vand.u32 15, %v1145_v60  ;;  %vm426_vm15 = vcmp.lt.s32.totalorder %v1140_v56, 127 }
  0xb5   : > { %vm447_vm1 = vcmp.lt.s32.totalorder %v1140_v56, 113  ;;  %vm175_vm2 = vcmp.lt.s32.totalorder %v1145_v60, 240  ;;  %vm468_vm3 = vcmp.lt.s32.totalorder %v1140_v56, 112 }
  0xb6   : > { %v1106_v30 = vadd.f32 %v328_v27, %v324_v28  ;;  %v1108_v31 = vadd.f32 %v328_v27, %v325_v29  ;;  %vm1156_vm8 = vcmp.ge.s32.totalorder %v167_v61, 1  ;;  %vm1173_vm12 = vcmp.le.s32.totalorder %v167_v61, 14 }
  0xb8   : > { %340 = vrot.lane.b32.xlu1 %v1108_v31, %s957_s20  ;;  %338 = vrot.lane.b32.xlu0 %v1106_v30, %s957_s20  ;;  %v336_v20 = vmul.f32 %v334_v42, %v1106_v30  ;;  %v337_v21 = vmul.f32 %v334_v42, %v1108_v31 }
  0xbc   : > { %v1138_v52 = vpop.permute.xlu2 %415 }
  0xc0   : > { %361 = vrot.lane.b32.xlu1 %v1108_v31, %s959_s29  ;;  %359 = vrot.lane.b32.xlu0 %v1106_v30, %s959_s29 }
  0xc5   : > { %v1142_v59 = vpop.permute.xlu2 %436 }
  0xc8   : > { %382 = vrot.lane.b32.xlu1 %v1108_v31, %s961_s30  ;;  %380 = vrot.lane.b32.xlu0 %v1106_v30, %s961_s30 }
  0xce   : > { %v458_v5 = vpop.permute.xlu2 %457 }
  0xd0   : > { %403 = vrot.lane.b32.xlu1 %v1108_v31, %s963_s3  ;;  %401 = vrot.lane.b32.xlu0 %v1106_v30, %s963_s3 }
  0xd8   : > { %424 = vrot.lane.b32.xlu1 %v1108_v31, %s966_s4  ;;  %422 = vrot.lane.b32.xlu0 %v1106_v30, %s966_s4 }
  0xe0   : > { %445 = vrot.lane.b32.xlu1 %v1108_v31, %s969_s5  ;;  %443 = vrot.lane.b32.xlu0 %v1106_v30, %s969_s5 }
  0xe8   : > { %466 = vrot.lane.b32.xlu1 %v1108_v31, %s970_s6  ;;  %464 = vrot.lane.b32.xlu0 %v1106_v30, %s970_s6 }
  0xf0   : > { %487 = vrot.lane.b32.xlu1 %v1108_v31, %s972_s7  ;;  %485 = vrot.lane.b32.xlu0 %v1106_v30, %s972_s7  ;;  %v479_v30 = vpop.permute.xlu2 %478 }
  0xf8   : > { %507 = vperm.xlu0 %832, %v1092_v3   ;;  %573 = vperm.xlu1 %833, %v1092_v3  }
 0x100   : > { %835 = vset.pattern.permute.xlu1 %v973_v40  ;;  %837 = vset.pattern.permute.xlu0 %v974_v41 }
 0x101   : > { %591 = vperm.xlu1 %835, %v1092_v3   ;;  %611 = vperm.xlu0 %837, %v1092_v3   ;;  %v166_v3 = vand.u32 15, %v1140_v56 }
 0x103   : > { %vm1149_vm4 = vcmp.ge.s32.totalorder %v166_v3, 1  ;;  %vm1166_vm10 = vcmp.le.s32.totalorder %v166_v3, 14 }
 0x104   : > { %vm176_vm9 = vmand %vm1149_vm4, %vm172_vm5 }
 0x105   : > { %vm1182_vm14 = vmand %vm1166_vm10, %vm172_vm5 }
 0x12a   : > { %v341_v47 = vpop.permute.xlu1 %340  ;;  %v339_v48 = vpop.permute.xlu0 %338 }
 0x12b   : > { %v343_v2 = vsel %vm342_vm6, %v339_v48, %v341_v47  ;;  %v344_v4 = vsel %vm342_vm6, %v341_v47, %v339_v48  ;;  %vm489_vm6 = vcmp.lt.s32.totalorder %v1140_v56, 111 }
 0x12c   : > { %v349_v7 = vsel %vm176_vm9, %v344_v4, 0.0  ;;  %v350_v8 = vsel %vm1156_vm8, %v343_v2, 0.0 }
 0x12d   : > { %v355_v15 = vmul.f32 %v353_v44, %v349_v7  ;;  %v356_v16 = vmul.f32 %v353_v44, %v350_v8 }
 0x12f   : > { %v357_v28 = vadd.f32 %v355_v15, %v336_v20  ;;  %v358_v29 = vadd.f32 %v356_v16, %v337_v21 }
 0x132   : > { %v362_v50 = vpop.permute.xlu1 %361  ;;  %v360_v51 = vpop.permute.xlu0 %359 }
 0x133   : > { %v365_v6 = vsel %vm363_vm7, %v362_v50, %v360_v51  ;;  %v364_v10 = vsel %vm363_vm7, %v360_v51, %v362_v50 }
 0x134   : > { %v370_v11 = vsel %vm172_vm5, %v365_v6, 0.0  ;;  %v377_v23 = vmul.f32 %v374_v46, %v364_v10  ;;  %vm1212_vm5 = vmand %vm1156_vm8, %vm175_vm2 }
 0x135   : > { %v376_v22 = vmul.f32 %v374_v46, %v370_v11 }
 0x136   : > { %v379_v38 = vadd.f32 %v377_v23, %v358_v29 }
 0x137   : > { %v378_v37 = vadd.f32 %v376_v22, %v357_v28 }
 0x13a   : > { %v383_v53 = vpop.permute.xlu1 %382  ;;  %v381_v54 = vpop.permute.xlu0 %380 }
 0x13b   : > { %v385_v18 = vsel %vm384_vm11, %v381_v54, %v383_v53  ;;  %v386_v19 = vsel %vm384_vm11, %v383_v53, %v381_v54 }
 0x13c   : > { %v391_v24 = vsel %vm1182_vm14, %v386_v19, 0.0  ;;  %v392_v25 = vsel %vm1173_vm12, %v385_v18, 0.0 }
 0x13d   : > { %v397_v33 = vmul.f32 %v395_v49, %v391_v24  ;;  %v398_v34 = vmul.f32 %v395_v49, %v392_v25 }
 0x13f   : > { %v399_v48 = vadd.f32 %v397_v33, %v378_v37  ;;  %v400_v49 = vadd.f32 %v398_v34, %v379_v38 }
 0x142   : > { %v404_v57 = vpop.permute.xlu1 %403  ;;  %v402_v58 = vpop.permute.xlu0 %401 }
 0x143   : > { %v406_v26 = vsel %vm405_vm13, %v402_v58, %v404_v57  ;;  %v407_v27 = vsel %vm405_vm13, %v404_v57, %v402_v58 }
 0x144   : > { %v412_v35 = vsel %vm1149_vm4, %v407_v27, 0.0  ;;  %v413_v36 = vsel %vm1156_vm8, %v406_v26, 0.0 }
 0x145   : > { %v418_v46 = vmul.f32 %v1138_v52, %v412_v35  ;;  %v419_v47 = vmul.f32 %v1138_v52, %v413_v36 }
 0x147   : > { %v420_v57 = vadd.f32 %v418_v46, %v399_v48  ;;  %v421_v58 = vadd.f32 %v419_v47, %v400_v49 }
 0x14a   : > { %v425_v63 = vpop.permute.xlu1 %424  ;;  %v423_v0 = vpop.permute.xlu0 %422 }
 0x14b   : > { %v427_v31 = vsel %vm426_vm15, %v423_v0, %v425_v63  ;;  %v428_v32 = vsel %vm426_vm15, %v425_v63, %v423_v0 }
 0x14c   : > { %v433_v41 = vsel %vm1166_vm10, %v427_v31, 0.0  ;;  %v434_v42 = vsel %vm1173_vm12, %v428_v32, 0.0 }
 0x14d   : > { %v439_v51 = vmul.f32 %v1142_v59, %v433_v41  ;;  %v440_v53 = vmul.f32 %v1142_v59, %v434_v42  ;;  %v500_v59 = vpop.permute.xlu2 %499 }
 0x14f   : > { %v441_v62 = vadd.f32 %v439_v51, %v420_v57  ;;  %v442_v0 = vadd.f32 %v440_v53, %v421_v58 }
 0x152   : > { %v446_v13 = vpop.permute.xlu1 %445  ;;  %v444_v14 = vpop.permute.xlu0 %443 }
 0x153   : > { %v448_v43 = vsel %vm447_vm1, %v444_v14, %v446_v13  ;;  %v449_v44 = vsel %vm447_vm1, %v446_v13, %v444_v14 }
 0x154   : > { %v454_v54 = vsel %vm1149_vm4, %v448_v43, 0.0  ;;  %v455_v55 = vsel %vm1212_vm5, %v449_v44, 0.0  ;;  %vm183_vm4 = vmand %vm1173_vm12, %vm175_vm2 }
 0x155   : > { %v460_v61 = vmul.f32 %v458_v5, %v454_v54  ;;  %v461_v63 = vmul.f32 %v458_v5, %v455_v55 }
 0x157   : > { %v462_v10 = vadd.f32 %v460_v61, %v441_v62  ;;  %v463_v11 = vadd.f32 %v461_v63, %v442_v0 }
 0x15a   : > { %v467_v39 = vpop.permute.xlu1 %466  ;;  %v465_v40 = vpop.permute.xlu0 %464 }
 0x15b   : > { %v470_v50 = vsel %vm468_vm3, %v467_v39, %v465_v40  ;;  %v469_v52 = vsel %vm468_vm3, %v465_v40, %v467_v39 }
 0x15c   : > { %v476_v3 = vsel %vm175_vm2, %v470_v50, 0.0  ;;  %v481_v4 = vmul.f32 %v479_v30, %v469_v52 }
 0x15d   : > { %v482_v6 = vmul.f32 %v479_v30, %v476_v3  ;;  %v977_v3 = vmov -1.0  }
 0x15e   : > { %v483_v14 = vadd.f32 %v481_v4, %v462_v10 }
 0x15f   : > { %v484_v15 = vadd.f32 %v482_v6, %v463_v11 }
 0x162   : > { %v488_v1 = vpop.permute.xlu1 %487  ;;  %v486_v2 = vpop.permute.xlu0 %485 }
 0x163   : > { %v490_v7 = vsel %vm489_vm6, %v486_v2, %v488_v1  ;;  %v491_v8 = vsel %vm489_vm6, %v488_v1, %v486_v2  ;;  %v582_v2 = vpop.permute.xlu2 %581 }
 0x164   : > { %v496_v5 = vsel %vm1166_vm10, %v490_v7, 0.0  ;;  %v497_v60 = vsel %vm183_vm4, %v491_v8, 0.0 }
 0x165   : > { %v502_v12 = vmul.f32 %v500_v59, %v496_v5  ;;  %v503_v13 = vmul.f32 %v500_v59, %v497_v60 }
 0x167   : > { %v505_v16 = vadd.f32 %v503_v13, %v484_v15  ;;  %v504_v17 = vadd.f32 %v502_v12, %v483_v14 }
 0x16a   : > { %v508_v18 = vpop.permute.xlu0 %507  ;;  %v574_v59 = vpop.permute.xlu1 %573 }
 0x16b   : > { %v1241_v19 = vadd.f32 %v508_v18, %v504_v17  ;;  %v1243_v20 = vadd.f32 %v508_v18, %v505_v16 }
 0x16d   : > { %v514_v56 = vmul.f32 0.70710677, %v1241_v19  ;;  %v515_v21 = vmul.f32 0.70710677, %v1243_v20  ;;  %v512_v4 = vmul.f32 0.5, %v1241_v19  ;;  %v513_v7 = vmul.f32 0.5, %v1243_v20 }
 0x16e   : > { %v566_v60 = vrot.slane %v1241_v19, 4  ;;  %v567_v11 = vrot.slane %v1243_v20, 4 }
 0x16f   : > { %v520_v9 = vand.u32 2147483647, %v514_v56  ;;  %v521_v22 = vand.u32 2147483647, %v515_v21  ;;  %vm516_vm7 = vcmp.ge.f32.partialorder %v514_v56, 0.0  ;;  %vm517_vm8 = vcmp.ge.f32.partialorder %v515_v21, 0.0 }
 0x170   : > { %v518_v61 = vsel %vm516_vm7, 1.0, %v977_v3  ;;  %v519_v62 = vsel %vm517_vm8, 1.0, %v977_v3 }
 0x171   : > { %v522_v23 = vmul.f32 0.3275911, %v520_v9  ;;  %v523_v24 = vmul.f32 0.3275911, %v521_v22  ;;  %v546_v28 = vsub.f32 0.0, %v520_v9  ;;  %v547_v31 = vsub.f32 0.0, %v521_v22 }
 0x173   : > { %v524_v25 = vadd.f32 1.0, %v522_v23  ;;  %v525_v26 = vadd.f32 1.0, %v523_v24  ;;  %v548_v35 = vmul.f32 %v546_v28, %v520_v9  ;;  %v549_v37 = vmul.f32 %v547_v31, %v521_v22  ;;  %v592_v56 = vpop.permute.xlu1 %591 }
 0x175   : > { %840 = vrcp.f32 %v524_v25  ;;  %v550_v41 = vmul.f32 1.442695, %v548_v35  ;;  %v552_v43 = vmul.f32 1.442695, %v549_v37 }
 0x176   : > { %842 = vrcp.f32 %v525_v26  ;;  %v602_v26 = vpop.permute.xlu2 %601  ;;  %v618_v37 = vld.sshfl [vmem:[#allocation1 + $0x8] sm:$0xff pattern:$0x75316420] }
 0x177   : > { %844 = vpow2.f32 %v550_v41 }
 0x178   : > { %846 = vpow2.f32 %v552_v43 }
 0x17b   : > { %v841_v27 = vpop.eup %840 }
 0x17c   : > { %v843_v29 = vpop.eup %842  ;;  %v528_v30 = vmul.f32 1.0614054, %v841_v27 }
 0x17d   : > { %v529_v32 = vmul.f32 1.0614054, %v843_v29  ;;  %v845_v53 = vpop.eup %844 }
 0x17e   : > { %v530_v33 = vadd.f32 -1.4531521, %v528_v30  ;;  %v847_v55 = vpop.eup %846 }
 0x17f   : > { %v531_v34 = vadd.f32 -1.4531521, %v529_v32 }
 0x180   : > { %v532_v36 = vmul.f32 %v841_v27, %v530_v33 }
 0x181   : > { %v533_v38 = vmul.f32 %v843_v29, %v531_v34  ;;  %v612_v34 = vpop.permute.xlu0 %611 }
 0x182   : > { %v534_v39 = vadd.f32 1.4214138, %v532_v36 }
 0x183   : > { %v535_v40 = vadd.f32 1.4214138, %v533_v38 }
 0x184   : > { %v536_v42 = vmul.f32 %v841_v27, %v534_v39 }
 0x185   : > { %v537_v44 = vmul.f32 %v843_v29, %v535_v40  ;;  %v617_v40 = vld.sshfl [vmem:[#allocation1] sm:$0xff pattern:$0x75316420] }
 0x186   : > { %v538_v45 = vadd.f32 -0.28449672, %v536_v42 }
 0x187   : > { %v539_v46 = vadd.f32 -0.28449672, %v537_v44 }
 0x188   : > { %v540_v47 = vmul.f32 %v841_v27, %v538_v45 }
 0x189   : > { %v541_v48 = vmul.f32 %v843_v29, %v539_v46 }
 0x18a   : > { %v542_v49 = vadd.f32 0.2548296, %v540_v47 }
 0x18b   : > { %v543_v50 = vadd.f32 0.2548296, %v541_v48 }
 0x18c   : > { %v544_v51 = vmul.f32 %v841_v27, %v542_v49 }
 0x18d   : > { %v545_v54 = vmul.f32 %v843_v29, %v543_v50 }
 0x18e   : > { %v554_v57 = vmul.f32 %v845_v53, %v544_v51 }
 0x18f   : > { %v555_v58 = vmul.f32 %v847_v55, %v545_v54 }
 0x190   : > { %v556_v52 = vsub.f32 1.0, %v554_v57 }
 0x191   : > { %v557_v63 = vsub.f32 1.0, %v555_v58 }
 0x192   : > { %v558_v0 = vmul.f32 %v556_v52, %v518_v61 }
 0x193   : > { %v559_v1 = vmul.f32 %v557_v63, %v519_v62 }
 0x194   : > { %v560_v6 = vadd.f32 1.0, %v558_v0 }
 0x195   : > { %v561_v8 = vadd.f32 1.0, %v559_v1 }
 0x196   : > { %v562_v5 = vmul.f32 %v560_v6, %v512_v4 }
 0x197   : > { %v563_v10 = vmul.f32 %v561_v8, %v513_v7 }
 0x198   : > { %v570_v12 = vmul.f32 %v566_v60, %v562_v5 }
 0x199   : > { %v571_v13 = vmul.f32 %v567_v11, %v563_v10 }
 0x19a   : > { %v584_v14 = vperm.slane %v570_v12, 1  ;;  %v576_v15 = vperm.slane %v570_v12, 0  ;;  %v594_v16 = vperm.slane %v570_v12, 2  ;;  %v604_v23 = vperm.slane %v570_v12, 3 }
 0x19b   : > { %v585_v17 = vperm.slane %v571_v13, 1  ;;  %v577_v18 = vperm.slane %v571_v13, 0  ;;  %v595_v21 = vperm.slane %v571_v13, 2  ;;  %v605_v19 = vperm.slane %v571_v13, 3 }
 0x19c   : > { %v586_v9 = vmul.f32 %v584_v14, %v582_v2  ;;  %v578_v22 = vmul.f32 %v576_v15, %v574_v59  ;;  %v596_v28 = vmul.f32 %v594_v16, %v592_v56  ;;  %v606_v30 = vmul.f32 %v604_v23, %v602_v26 }
 0x19d   : > { %v587_v24 = vmul.f32 %v585_v17, %v582_v2  ;;  %v579_v25 = vmul.f32 %v577_v18, %v574_v59  ;;  %v597_v29 = vmul.f32 %v595_v21, %v592_v56  ;;  %v607_v32 = vmul.f32 %v605_v19, %v602_v26 }
 0x19e   : > { %v588_v27 = vadd.f32 %v586_v9, %v578_v22 }
 0x19f   : > { %v589_v20 = vadd.f32 %v587_v24, %v579_v25 }
 0x1a0   : > { %v598_v31 = vadd.f32 %v596_v28, %v588_v27 }
 0x1a1   : > { %v599_v33 = vadd.f32 %v597_v29, %v589_v20 }
 0x1a2   : > { %v608_v35 = vadd.f32 %v606_v30, %v598_v31 }
 0x1a3   : > { %v609_v36 = vadd.f32 %v607_v32, %v599_v33 }
 0x1a4   : > { %v614_v38 = vadd.f32 %v612_v34, %v608_v35 }
 0x1a5   : > { %v615_v39 = vadd.f32 %v612_v34, %v609_v36 }
 0x1a6   : > { %v621_v42 = vadd.f32 %v617_v40, %v614_v38 }
 0x1a7   : > { %v622_v41 = vadd.f32 %v618_v37, %v615_v39 }
 0x1a9   : > { %v625_v43 = vrot.slane %v622_v41, 4 }
 0x1ab   : > { %v626_v44 = vsel %vm209_vm0, %v621_v42, %v625_v43 }
 0x1ac   : > { %628 = vst [vmem:[%s161_s19] sm:$0xff] %v626_v44 }
 0x1ad   : > { %905 = shalt.err (!%p902_p4)
}
 0x1ae   : > { %740 = dma.vmem_to_hbm [thread:$0]  (%p1043_p11), %s644_s25, 128, %s646_s26, %s630_s13  }
 0x1af PF: > { %s657_s23 = sand.u32 1, %s932_s9   ;;  %p1307_p7 = scmp.ge.s32.totalorder %s944_s12, 2 }
 0x1b0   : > { %s658_s4 = scalar_lea.sflag [#allocation4], %s657_s23 }
 0x1b1   : > { %p747_p5 = pnand %p1307_p7, %p1047_p12 }
 0x1b3   : > { %p748_p8 = pneg %p747_p5 }
 0x1b5   : > { %927 = dma.done.wait (%p748_p8), %s658_s4, 128  }
 0x1b6   : > { %929 = vsyncadd (%p748_p8), %s658_s4, 4294967168  ;;  %p15_p10 = scmp.ge.s32.totalorder %s1018_s15, 4   ;;  %s1308_s9 = smov %s936_s10 }
 0x1b7   : > { %s1309_s10 = smov %s940_s11  ;;  %s1310_s11 = smov %s1030_s18 }
 0x1b8   : > { %s1311_s12 = smov %s1018_s15  ;;  %17 = sbr.rel (!%p15_p10) target bundleno = 5 (0x5), region = 73 }
 0x1bd   :  { %664 = vsyncpa [#allocation3], 1 }
 0x1be   :  { %666 = vsyncpa [#allocation3 + $0x1], 1 }
 0x1bf   :  { %667 = vsyncpa [#allocation4], 1 }
 0x1c0   :  { %669 = vsyncpa [#allocation4 + $0x1], 1 }

</bundles_post_ra>
